<compile_context>
chip_gen: v7x
topology: tpu7x:2x2x1
jax: 0.10.0
libtpu: 0.0.40
codegen_flags: <defaults>
</compile_context>

<pallas_src>
import functools

import jax
import jax.numpy as jnp
from jax import lax
from jax.experimental import pallas as pl
from jax.experimental.pallas import tpu as pltpu


# bf16 x bf16 -> f32 runs natively on the TPU MXU; other backends need f32 operands.
_MXU_INPUT_DTYPE = jnp.bfloat16 if jax.default_backend() == "tpu" else jnp.float32


def _pick_tile(dim, target=512, align=128):
    """Largest 128-aligned tile <= target that divides dim, else the full extent."""
    if dim <= target:
        return dim                      # full-extent block: always legal
    t = (target // align) * align
    while t >= align:
        if dim % t == 0:
            return t
        t -= align
    return dim                          # non-divisible large dim: fall back to full extent


def _pick_batch_block(B, M, N, K, tm, tn, tk):
    """Fold several batches per grid step when each batch is a single small tile."""
    if tm < M or tn < N or tk < K:
        return 1                        # per-batch work already tiled -> one batch/step
    if M * K + K * N + N * M > 128 * 1024:
        return 1                        # keep the folded block comfortably inside VMEM
    for cand in (8, 4, 2):
        if B % cand == 0:
            return cand
    return 1


def _bmm_transpose_kernel(x_ref, y_ref, o_ref, acc_ref, *, bb, mxu_dtype):
    # x_ref: (bb, tm, tk)  y_ref: (bb, tk, tn)  o_ref: (bb, tn, tm)
    # acc_ref: (bb, tn, tm) f32 scratch, resident across the K grid axis.
    k = pl.program_id(3)

    @pl.when(k == 0)
    def _init():
        acc_ref[...] = jnp.zeros_like(acc_ref)

    for b in range(bb):                 # static unroll over folded batches
        x = x_ref[b].astype(mxu_dtype)  # (tm, tk)
        y = y_ref[b].astype(mxu_dtype)  # (tk, tn)
        # out[n, m] = sum_k y[k, n] * x[m, k]  -> accumulator is already (tn, tm),
        # so no transpose of the f32 result is ever needed.
        acc_ref[b] += lax.dot_general(
            y, x,
            dimension_numbers=(((0,), (1,)), ((), ())),
            preferred_element_type=jnp.float32,
        )

    @pl.when(k == pl.num_programs(3) - 1)
    def _store():
        o_ref[...] = acc_ref[...].astype(o_ref.dtype)


def bmm_transpose(x1, y1):
    """transpose(matmul(x1, y1), 1, 2): [B,M,K] x [B,K,N] -> [B,N,M]."""
    B, M, K = x1.shape
    B2, K2, N = y1.shape
    assert B == B2 and K == K2, "shape mismatch for batched matmul"

    tm = _pick_tile(M)   # last dim of the output block -> keep it lane-dense
    tn = _pick_tile(N)
    tk = _pick_tile(K)
    bb = _pick_batch_block(B, M, N, K, tm, tn, tk)

    grid = (B // bb, N // tn, M // tm, K // tk)

    kernel = functools.partial(_bmm_transpose_kernel, bb=bb,
                               mxu_dtype=_MXU_INPUT_DTYPE)

    grid_spec = pltpu.PrefetchScalarGridSpec(
        num_scalar_prefetch=0,
        grid=grid,
        in_specs=[
            # x tile index is independent of j (the N axis); y tile independent of i.
            pl.BlockSpec((bb, tm, tk), lambda b, j, i, k: (b, i, k)),
            pl.BlockSpec((bb, tk, tn), lambda b, j, i, k: (b, k, j)),
        ],
        out_specs=pl.BlockSpec((bb, tn, tm), lambda b, j, i, k: (b, j, i)),
        scratch_shapes=[pltpu.VMEM((bb, tn, tm), jnp.float32)],
    )

    itemsize = x1.dtype.itemsize
    cost = pl.CostEstimate(
        flops=2 * B * M * N * K,
        transcendentals=0,
        bytes_accessed=(B * M * K + B * K * N + B * N * M) * itemsize,
    )

    return pl.pallas_call(
        kernel,
        out_shape=jax.ShapeDtypeStruct((B, N, M), x1.dtype),
        grid_spec=grid_spec,
        compiler_params=pltpu.CompilerParams(
            dimension_semantics=("parallel", "parallel", "parallel", "arbitrary"),
        ),
        cost_estimate=cost,
    )(x1, y1)


if __name__ == "__main__":
    # Small deterministic inputs consistent with the module's forward (bf16 bmm).
    key = jax.random.PRNGKey(0)
    kx, ky = jax.random.split(key)
    B, M, K, N = 2, 8, 32, 16
    x1 = jax.random.normal(kx, (B, M, K), dtype=jnp.float32).astype(jnp.bfloat16)
    y1 = jax.random.normal(ky, (B, K, N), dtype=jnp.float32).astype(jnp.bfloat16)

    out = bmm_transpose(x1, y1)
    out = jax.block_until_ready(out)

    # Reference check in plain JAX (f32 math, then bf16 cast).
    ref = jnp.swapaxes(
        jnp.matmul(x1.astype(jnp.float32), y1.astype(jnp.float32)), 1, 2
    ).astype(jnp.bfloat16)
    assert out.shape == (B, N, M), out.shape
    assert out.dtype == jnp.bfloat16, out.dtype
    assert jnp.allclose(out.astype(jnp.float32), ref.astype(jnp.float32),
                        atol=1e-1, rtol=1e-1), "mismatch vs reference"

    print("KERNEL_OK")
</pallas_src>

<mosaic_0001>
module attributes {stable_mosaic.version = 11 : i64} {
  func.func @_bmm_transpose_kernel(%arg0: i32, %arg1: i32, %arg2: i32, %arg3: i32, %arg4: memref<2x8x32xbf16, #tpu.memory_space<vmem>>, %arg5: memref<2x32x16xbf16, #tpu.memory_space<vmem>>, %arg6: memref<2x16x8xbf16, #tpu.memory_space<vmem>>, %arg7: memref<2x16x8xf32, #tpu.memory_space<vmem>>) attributes {dimension_semantics = [#tpu.dimension_semantics<parallel>, #tpu.dimension_semantics<parallel>, #tpu.dimension_semantics<parallel>, #tpu.dimension_semantics<arbitrary>], iteration_bounds = array<i64: 1, 1, 1, 1>, scalar_prefetch = 0 : i64, scratch_operands = 1 : i64, tpu.core_type = #tpu.core_type<tc>, window_params = [{transform_indices = @transform_0, window_bounds = array<i64: 2, 8, 32>}, {transform_indices = @transform_1, window_bounds = array<i64: 2, 32, 16>}, {transform_indices = @transform_2, window_bounds = array<i64: 2, 16, 8>}]} {
    %c0_i32 = arith.constant 0 : i32
    %0 = arith.cmpi eq, %arg3, %c0_i32 : i32
    %1 = arith.extui %0 : i1 to i32
    %c0_i32_0 = arith.constant 0 : i32
    %2 = arith.cmpi ne, %1, %c0_i32_0 : i32
    scf.if %2 {
      %cst_26 = arith.constant 0.000000e+00 : f32
      %32 = vector.broadcast %cst_26 : f32 to vector<2x16x8xf32>
      %c0_27 = arith.constant 0 : index
      %c0_28 = arith.constant 0 : index
      %c0_29 = arith.constant 0 : index
      %33 = vector.load %arg7[%c0_27, %c0_28, %c0_29] : memref<2x16x8xf32, #tpu.memory_space<vmem>>, vector<2x16x8xf32>
      tpu.vector_store %arg7[%c0_27, %c0_28, %c0_29], %32 {strides = array<i32>} : memref<2x16x8xf32, #tpu.memory_space<vmem>>, vector<2x16x8xf32>,
    } else {
    }
    %c0 = arith.constant 0 : index
    %c0_1 = arith.constant 0 : index
    %c0_2 = arith.constant 0 : index
    %3 = vector.load %arg4[%c0, %c0_1, %c0_2] : memref<2x8x32xbf16, #tpu.memory_space<vmem>>, vector<1x8x32xbf16>
    %4 = vector.shape_cast %3 : vector<1x8x32xbf16> to vector<8x32xbf16>
    %5 = arith.extf %4 : vector<8x32xbf16> to vector<8x32xf32>
    %c0_3 = arith.constant 0 : index
    %c0_4 = arith.constant 0 : index
    %c0_5 = arith.constant 0 : index
    %6 = vector.load %arg5[%c0_3, %c0_4, %c0_5] : memref<2x32x16xbf16, #tpu.memory_space<vmem>>, vector<1x32x16xbf16>
    %7 = vector.shape_cast %6 : vector<1x32x16xbf16> to vector<32x16xbf16>
    %8 = arith.extf %7 : vector<32x16xbf16> to vector<32x16xf32>
    %c0_6 = arith.constant 0 : index
    %c0_7 = arith.constant 0 : index
    %c0_8 = arith.constant 0 : index
    %9 = vector.load %arg7[%c0_6, %c0_7, %c0_8] : memref<2x16x8xf32, #tpu.memory_space<vmem>>, vector<1x16x8xf32>
    %10 = vector.shape_cast %9 : vector<1x16x8xf32> to vector<16x8xf32>
    %cst = arith.constant dense<0.000000e+00> : vector<16x8xf32>
    %11 = tpu.matmul %8, %5, %cst {dimension_numbers = #tpu.dot_dimension_numbers<[0], [1], [1], [0], [0, 1, 1, 0], [], []>} : vector<32x16xf32>, vector<8x32xf32>, vector<16x8xf32> -> vector<16x8xf32>
    %12 = arith.addf %10, %11 : vector<16x8xf32>
    %c0_9 = arith.constant 0 : index
    %c0_10 = arith.constant 0 : index
    %c0_11 = arith.constant 0 : index
    %13 = vector.load %arg7[%c0_9, %c0_10, %c0_11] : memref<2x16x8xf32, #tpu.memory_space<vmem>>, vector<1x16x8xf32>
    %14 = vector.shape_cast %13 : vector<1x16x8xf32> to vector<16x8xf32>
    %15 = vector.shape_cast %12 : vector<16x8xf32> to vector<1x16x8xf32>
    tpu.vector_store %arg7[%c0_9, %c0_10, %c0_11], %15 {strides = array<i32>} : memref<2x16x8xf32, #tpu.memory_space<vmem>>, vector<1x16x8xf32>,
    %c1 = arith.constant 1 : index
    %c0_12 = arith.constant 0 : index
    %c0_13 = arith.constant 0 : index
    %16 = vector.load %arg4[%c1, %c0_12, %c0_13] : memref<2x8x32xbf16, #tpu.memory_space<vmem>>, vector<1x8x32xbf16>
    %17 = vector.shape_cast %16 : vector<1x8x32xbf16> to vector<8x32xbf16>
    %18 = arith.extf %17 : vector<8x32xbf16> to vector<8x32xf32>
    %c1_14 = arith.constant 1 : index
    %c0_15 = arith.constant 0 : index
    %c0_16 = arith.constant 0 : index
    %19 = vector.load %arg5[%c1_14, %c0_15, %c0_16] : memref<2x32x16xbf16, #tpu.memory_space<vmem>>, vector<1x32x16xbf16>
    %20 = vector.shape_cast %19 : vector<1x32x16xbf16> to vector<32x16xbf16>
    %21 = arith.extf %20 : vector<32x16xbf16> to vector<32x16xf32>
    %c1_17 = arith.constant 1 : index
    %c0_18 = arith.constant 0 : index
    %c0_19 = arith.constant 0 : index
    %22 = vector.load %arg7[%c1_17, %c0_18, %c0_19] : memref<2x16x8xf32, #tpu.memory_space<vmem>>, vector<1x16x8xf32>
    %23 = vector.shape_cast %22 : vector<1x16x8xf32> to vector<16x8xf32>
    %cst_20 = arith.constant dense<0.000000e+00> : vector<16x8xf32>
    %24 = tpu.matmul %21, %18, %cst_20 {dimension_numbers = #tpu.dot_dimension_numbers<[0], [1], [1], [0], [0, 1, 1, 0], [], []>} : vector<32x16xf32>, vector<8x32xf32>, vector<16x8xf32> -> vector<16x8xf32>
    %25 = arith.addf %23, %24 : vector<16x8xf32>
    %c1_21 = arith.constant 1 : index
    %c0_22 = arith.constant 0 : index
    %c0_23 = arith.constant 0 : index
    %26 = vector.load %arg7[%c1_21, %c0_22, %c0_23] : memref<2x16x8xf32, #tpu.memory_space<vmem>>, vector<1x16x8xf32>
    %27 = vector.shape_cast %26 : vector<1x16x8xf32> to vector<16x8xf32>
    %28 = vector.shape_cast %25 : vector<16x8xf32> to vector<1x16x8xf32>
    tpu.vector_store %arg7[%c1_21, %c0_22, %c0_23], %28 {strides = array<i32>} : memref<2x16x8xf32, #tpu.memory_space<vmem>>, vector<1x16x8xf32>,
    %c0_i32_24 = arith.constant 0 : i32
    %29 = arith.cmpi eq, %arg3, %c0_i32_24 : i32
    %30 = arith.extui %29 : i1 to i32
    %c0_i32_25 = arith.constant 0 : i32
    %31 = arith.cmpi ne, %30, %c0_i32_25 : i32
    scf.if %31 {
      %c0_26 = arith.constant 0 : index
      %c0_27 = arith.constant 0 : index
      %c0_28 = arith.constant 0 : index
      %32 = vector.load %arg7[%c0_26, %c0_27, %c0_28] : memref<2x16x8xf32, #tpu.memory_space<vmem>>, vector<2x16x8xf32>
      %33 = arith.truncf %32 : vector<2x16x8xf32> to vector<2x16x8xbf16>
      %c0_29 = arith.constant 0 : index
      %c0_30 = arith.constant 0 : index
      %c0_31 = arith.constant 0 : index
      %34 = vector.load %arg6[%c0_29, %c0_30, %c0_31] : memref<2x16x8xbf16, #tpu.memory_space<vmem>>, vector<2x16x8xbf16>
      tpu.vector_store %arg6[%c0_29, %c0_30, %c0_31], %33 {strides = array<i32>} : memref<2x16x8xbf16, #tpu.memory_space<vmem>>, vector<2x16x8xbf16>,
    } else {
    }
    return
  }
  func.func @transform_0(%arg0: i32, %arg1: i32, %arg2: i32, %arg3: i32) -> (i32, i32, i32) {
    %c0_i32 = arith.constant 0 : i32
    return %arg0, %arg2, %arg3 : i32, i32, i32
  }
  func.func @transform_1(%arg0: i32, %arg1: i32, %arg2: i32, %arg3: i32) -> (i32, i32, i32) {
    %c0_i32 = arith.constant 0 : i32
    return %arg0, %arg3, %arg1 : i32, i32, i32
  }
  func.func @transform_2(%arg0: i32, %arg1: i32, %arg2: i32, %arg3: i32) -> (i32, i32, i32) {
    %c0_i32 = arith.constant 0 : i32
    return %arg0, %arg1, %arg2 : i32, i32, i32
  }
}

</mosaic_0001>

<bundles_post_ra>
// kernel: tpu_custom_call.1
= control target key start
LH: loop header
LB: loop body
LE: loop exit
PB: predicated region body
PF: predicated region fallthrough
CT: control target
= control target key end

     0   :  { %vm64_vm0 = vcmask 261120   ;;  %vm15_vm1 = vcmask 64512   ;;  %v394_v19 = vmov 0.0   ;;  %vm312_vm2 = vcmask 60416   ;;  %s453_s1 = inlined_call_operand.vmem [shape: bf16[2,32,16], index: 1, kind: input, shape index: {}]   ;;  %s454_s0 = inlined_call_operand.vmem [shape: bf16[2,8,32], index: 0, kind: input, shape index: {}]   ;;  %s455_s2 = inlined_call_operand.vmem [shape: bf16[2,16,8], index: 2, kind: output, shape index: {}]  }
   0x1   :  { %v341_v0 = vld [vmem:[%s453_s1] sm:$0xff]   ;;  %v357_v1 = vld [vmem:[%s453_s1 + $0x10] sm:$0xff]   ;;  %v356_v6 = vld [vmem:[%s453_s1 + $0x8] sm:$0xff]   ;;  %17 = vst.msk [vmem:[#allocation2 + $0x8] sm:$0xff] %vm15_vm1, %v394_v19 }
   0x2   :  { %v342_v2 = vunpack.c.l.bf16 %v341_v0  ;;  %v350_v3 = vunpack.c.l.bf16 %v357_v1  ;;  %v343_v4 = vunpack.c.h.bf16 %v341_v0  ;;  %v351_v5 = vunpack.c.h.bf16 %v357_v1  ;;  %v358_v7 = vld [vmem:[%s453_s1 + $0x18] sm:$0xff]   ;;  %v20_v12 = vld [vmem:[%s454_s0] sm:$0xff]   ;;  %16 = vst.msk [vmem:[#allocation2] sm:$0xff] %vm15_vm1, %v394_v19  ;;  %18 = vst.msk [vmem:[#allocation2 + $0x10] sm:$0xff] %vm15_vm1, %v394_v19 }
   0x3   :  { %v346_v10 = vunpack.c.l.bf16 %v356_v6  ;;  %v354_v11 = vunpack.c.l.bf16 %v358_v7  ;;  %v21_v13 = vunpack.c.l.bf16 %v20_v12  ;;  %v156_v14 = vunpack.c.h.bf16 %v20_v12  ;;  %19 = vst.msk [vmem:[#allocation2 + $0x18] sm:$0xff] %vm15_vm1, %v394_v19 }
   0x4   :  { %v376_v8 = vpack.i.bf16 %v350_v3, %v342_v2  ;;  %v378_v9 = vpack.i.bf16 %v351_v5, %v343_v4  ;;  %v347_v16 = vunpack.c.h.bf16 %v356_v6  ;;  %v355_v17 = vunpack.c.h.bf16 %v358_v7 }
   0x5   :  { %365 = vmatprep.subr.msk.mxu0 %vm64_vm0, %v21_v13  ;;  %370 = vmatprep.subr.msk.mxu1 %vm64_vm0, %v156_v14  ;;  %v380_v15 = vpack.i.bf16 %v354_v11, %v346_v10 }
   0x6   :  { %377 = vxpose.xlu0.b32.start [1/4] (short) (narrow) %v376_v8, 16  ;;  %366 = vmatpush3.xpose.msk.msra.mxu0 %vm64_vm0, %v21_v13  ;;  %v382_v18 = vpack.i.bf16 %v355_v17, %v347_v16 }
   0x7   :  { %371 = vmatpush3.xpose.msk.msra.mxu1 %vm64_vm0, %v156_v14 }
   0x8   :  { %v31_v26 = vld [vmem:[#allocation2 + $0x8] sm:$0xff] }
   0x9   :  { %v30_v28 = vld [vmem:[#allocation2] sm:$0xff]  ;;  %v167_v29 = vld [vmem:[#allocation2 + $0x10] sm:$0xff] }
   0xa   :  { %379 = vxpose.xlu0.b32.cont [2/4] (short) (narrow) %v378_v9, 16  ;;  %v168_v27 = vld [vmem:[#allocation2 + $0x18] sm:$0xff] }
   0xe   :  { %381 = vxpose.xlu0.b32.cont [3/4] (short) (narrow) %v380_v15, 16 }
  0x12   :  { %383 = vxpose.xlu0.b32.end [4/4] (short) (narrow) %v382_v18, 16 }
  0x86   :  { %v384_v20 = vpop.trf.xlu0 }
  0x87   :  { %v385_v21 = vunpack.i.l.bf16 %v384_v20  ;;  %v388_v22 = vunpack.i.h.bf16 %v384_v20 }
  0x89   :  { %367 = vmatprep.mubr.msk.f32.mxu0 %vm64_vm0, %v385_v21  ;;  %372 = vmatprep.mubr.msk.f32.mxu1 %vm64_vm0, %v388_v22 }
  0x8a   :  { %v389_v23 = vpop.trf.xlu0 }
  0x8b   :  { %v393_v24 = vunpack.i.h.bf16 %v389_v23  ;;  %v390_v25 = vunpack.i.l.bf16 %v389_v23 }
  0x8d   :  { %368 = vmatmul.mubr.msk.f32.vlgmr.msra.gmra.mrb[0].mxu0 %vm64_vm0, %v390_v25  ;;  %373 = vmatmul.mubr.msk.f32.vlgmr.msra.gmra.mrb[0].mxu1 %vm64_vm0, %v393_v24 }
 0x160   :  { %v369_v30 = vpop.f32.mrb[0].mxu0  ;;  %v374_v31 = vpop.f32.mrb[0].mxu1 }
 0x161   :  { %v150_v32 = vadd.f32 %v369_v30, %v31_v26  ;;  %v286_v33 = vadd.f32 %v374_v31, %v168_v27  ;;  %v140_v34 = vpop.f32.mrb[1].mxu0  ;;  %v276_v35 = vpop.f32.mrb[1].mxu1 }
 0x162   :  { %v149_v36 = vadd.f32 %v140_v34, %v30_v28  ;;  %v285_v37 = vadd.f32 %v276_v35, %v167_v29 }
 0x163   :  { %153 = vst.msk [vmem:[#allocation2 + $0x8] sm:$0xff] %vm15_vm1, %v150_v32  ;;  %288 = vst.msk [vmem:[#allocation2 + $0x18] sm:$0xff] %vm15_vm1, %v286_v33 }
 0x164   :  { %152 = vst.msk [vmem:[#allocation2] sm:$0xff] %vm15_vm1, %v149_v36  ;;  %287 = vst.msk [vmem:[#allocation2 + $0x10] sm:$0xff] %vm15_vm1, %v285_v37 }
 0x16a   :  { %v293_v38 = vld [vmem:[#allocation2 + $0x8] sm:$0xff]  ;;  %v295_v39 = vld [vmem:[#allocation2 + $0x18] sm:$0xff] }
 0x16b   :  { %v337_v40 = vpack.c.bf16 %v293_v38, %v293_v38  ;;  %v339_v41 = vpack.c.bf16 %v295_v39, %v295_v39  ;;  %v292_v42 = vld [vmem:[#allocation2] sm:$0xff]  ;;  %v294_v43 = vld [vmem:[#allocation2 + $0x10] sm:$0xff] }
 0x16c   :  { %v336_v44 = vpack.c.bf16 %v292_v42, %v292_v42  ;;  %v338_v45 = vpack.c.bf16 %v294_v43, %v294_v43 }
 0x16d   :  { %314 = vst.msk [vmem:[%s455_s2 + $0x4] sm:$0xf] %vm312_vm2, %v337_v40  ;;  %316 = vst.msk [vmem:[%s455_s2 + $0xc] sm:$0xf] %vm312_vm2, %v339_v41 }
 0x16e   :  { %313 = vst.msk [vmem:[%s455_s2] sm:$0xf] %vm312_vm2, %v336_v44  ;;  %315 = vst.msk [vmem:[%s455_s2 + $0x8] sm:$0xf] %vm312_vm2, %v338_v45 }

</bundles_post_ra>
